<compile_context>
chip_gen: v6e
topology: v6e:2x2x1
jax: 0.10.0
libtpu: 0.0.40
codegen_flags: <defaults>
</compile_context>

<pallas_src>
import math
from functools import partial

import jax
import jax.numpy as jnp
from jax import lax
from jax.experimental import pallas as pl
from jax.experimental.pallas import tpu as pltpu

# ----------------------------- configuration --------------------------------
VOCAB = 20
D_MODEL = 32           # encoder_hidden == decoder_hidden == adim
N_HEAD = 2
D_K = 16
D_FF = 64
FFT_K1, FFT_K2 = 9, 1
N_MEL = 16             # n_mel_channels (small synthetic)
VP_FILTER = 32
VP_KERNEL = 3
N_BINS = 8
PHN_LATENT = 8         # phn_latent_dim
UE_CHANS = 32
UE_KERNEL = 5
UE_STRIDE = 3
PLE_CHANS = 32
PLE_KERNEL = 3
POSTNET_DIM = 32
POSTNET_K = 5
POSTNET_LAYERS = 5
NUM_SPK = 4
NUM_LANG = 2
ENC_LAYERS = 2
DEC_LAYERS = 2
MAX_SEQ = 64           # sinusoidal position table size

_PARALLEL = pltpu.CompilerParams(dimension_semantics=("parallel",))


# ------------------------- BlockSpec helpers ---------------------------------
def _spec_batch(a):
    """Block split along the leading batch dim; rest of the array resident."""
    nd = a.ndim
    return pl.BlockSpec((1,) + a.shape[1:],
                        lambda b, _n=nd: (b,) + (0,) * (_n - 1))


def _spec_rep(a):
    """Whole array replicated to every grid step (weights)."""
    nd = a.ndim
    return pl.BlockSpec(a.shape, lambda b, _n=nd: (0,) * _n)


# ------------------------- in-kernel building blocks -------------------------
def _ln(x, eps=1e-5):
    mu = jnp.mean(x, axis=-1, keepdims=True)
    var = jnp.mean(jnp.square(x - mu), axis=-1, keepdims=True)
    return (x - mu) * lax.rsqrt(var + eps)


def _conv1d_vmem(x, w_lane, b, k, pad, stride=1):
    """1-D conv on a VMEM-resident [T, Cin] tile.

    w_lane: [Cin, k*Cout] (tap-blocks along lanes), b: [1, Cout].
    Zero 'same-style' padding is realised with 0/1 shift matrices built from
    broadcasted_iota (no concatenate / pad ops), so the whole conv is one wide
    matmul + k small shift matmuls.
    """
    T, _ = x.shape
    cout = w_lane.shape[-1] // k
    if k == 1 and stride == 1 and pad == 0:
        return jnp.dot(x, w_lane, preferred_element_type=jnp.float32) + b
    t_out = (T + 2 * pad - k) // stride + 1
    xw = jnp.dot(x, w_lane, preferred_element_type=jnp.float32)        # [T, k*Cout]
    rows = lax.broadcasted_iota(jnp.int32, (t_out, T), 0)
    cols = lax.broadcasted_iota(jnp.int32, (t_out, T), 1)
    out = None
    for j in range(k):
        sel = (cols == rows * stride + (j - pad)).astype(jnp.float32)  # [t_out, T]
        y = jnp.dot(sel, xw[:, j * cout:(j + 1) * cout],
                    preferred_element_type=jnp.float32)
        out = y if out is None else out + y
    return out + b


def _cnn_latent_block(x, w1, b1, g1, be1, w2, b2, g2, be2, wo, bo, k):
    """conv+relu+LN, conv+relu+LN, linear head (phoneme-level CNNs)."""
    pad = (k - 1) // 2
    h = jnp.maximum(_conv1d_vmem(x, w1, b1, k, pad), 0.0)
    h = _ln(h) * g1 + be1
    h = jnp.maximum(_conv1d_vmem(h, w2, b2, k, pad), 0.0)
    h = _ln(h) * g2 + be2
    return jnp.dot(h, wo, preferred_element_type=jnp.float32) + bo


def _vp_branch(x, w1, b1, g1, be1, w2, b2, g2, be2, k):
    pad = (k - 1) // 2
    h = jnp.maximum(_conv1d_vmem(x, w1, b1, k, pad), 0.0)
    h = _ln(h) * g1 + be1
    h = jnp.maximum(_conv1d_vmem(h, w2, b2, k, pad), 0.0)
    h = _ln(h) * g2 + be2
    return h


# ----------------------------- Pallas kernels --------------------------------
def _linear_kernel(x_ref, w_ref, b_ref, o_ref):
    y = jnp.dot(x_ref[...], w_ref[...], preferred_element_type=jnp.float32)
    o_ref[...] = (y + b_ref[...]).astype(o_ref.dtype)


def linear(x, w, b):
    """y = x @ w + b with the full operands resident in VMEM (one launch)."""
    shape = x.shape
    K = shape[-1]
    M = int(math.prod(shape[:-1]))
    N = w.shape[1]
    out = pl.pallas_call(
        _linear_kernel,
        out_shape=jax.ShapeDtypeStruct((M, N), jnp.float32),
        grid=(1,),
        in_specs=[
            pl.BlockSpec((M, K), lambda i: (0, 0)),
            pl.BlockSpec((K, N), lambda i: (0, 0)),
            pl.BlockSpec((1, N), lambda i: (0, 0)),
        ],
        out_specs=pl.BlockSpec((M, N), lambda i: (0, 0)),
    )(x.reshape(M, K), w, b.reshape(1, N))
    return out.reshape(shape[:-1] + (N,))


def _fft_stack_kernel(x_ref, mrow_ref, mcol_ref, cln_ref,
                      wqkv_ref, bqkv_ref, wo_ref, bo_ref,
                      w1_ref, b1_ref, w2_ref, b2_ref, o_ref,
                      *, n_layers, n_head, d_k, k1, k2):
    """All FFT blocks of an encoder/decoder for one batch element, fused."""
    x = x_ref[0]                                  # [T, D]
    mrow = mrow_ref[0]                            # [1, T] (1.0 = padded key)
    mcol = mcol_ref[0]                            # [T, 1] (1.0 = padded frame)
    T, D = x.shape
    hd = n_head * d_k
    scale = 1.0 / math.sqrt(d_k)
    for l in range(n_layers):
        res = x
        # fused QKV projection (single lane-dense matmul)
        qkv = jnp.dot(x, wqkv_ref[l], preferred_element_type=jnp.float32) + bqkv_ref[l]
        # per-head attention; head-merge folded into the output projection
        attn = None
        for h in range(n_head):
            q = qkv[:, h * d_k:(h + 1) * d_k]
            kk = qkv[:, hd + h * d_k: hd + (h + 1) * d_k]
            v = qkv[:, 2 * hd + h * d_k: 2 * hd + (h + 1) * d_k]
            s = lax.dot_general(q, kk, (((1,), (1,)), ((), ())),
                                preferred_element_type=jnp.float32) * scale
            s = s - mrow * 1e9
            s = s - jnp.max(s, axis=-1, keepdims=True)
            p = jnp.exp(s)
            p = p * pl.reciprocal(jnp.sum(p, axis=-1, keepdims=True), approx=True)
            ctx = jnp.dot(p, v, preferred_element_type=jnp.float32)   # [T, d_k]
            part = jnp.dot(ctx, wo_ref[l, h * d_k:(h + 1) * d_k, :],
                           preferred_element_type=jnp.float32)
            attn = part if attn is None else attn + part
        out = attn + bo_ref[l]
        # speaker-conditioned LayerNorm (projections hoisted out of the kernel)
        cl = cln_ref[0, l:l + 1, :]               # [1, 4*D] = s1|b1|s2|b2
        s1, b1c = cl[:, 0:D], cl[:, D:2 * D]
        s2, b2c = cl[:, 2 * D:3 * D], cl[:, 3 * D:4 * D]
        out = _ln(out + res) * s1 + b1c
        out = jnp.where(mcol > 0.5, 0.0, out)

        res2 = out
        h1 = jnp.maximum(_conv1d_vmem(out, w1_ref[l], b1_ref[l], k1, (k1 - 1) // 2), 0.0)
        h2 = _conv1d_vmem(h1, w2_ref[l], b2_ref[l], k2, (k2 - 1) // 2)
        out = _ln(h2 + res2) * s2 + b2c
        out = jnp.where(mcol > 0.5, 0.0, out)
        x = out
    o_ref[0] = x.astype(o_ref.dtype)


def fft_stack(x, mask, cln, st):
    """x: [B,T,D]; mask: bool [B,T]; cln: [B,L,4*D]; st: stacked layer weights."""
    B, T, D = x.shape
    L = st["wqkv"].shape[0]
    mrow = mask.astype(jnp.float32).reshape(B, 1, T)
    mcol = mask.astype(jnp.float32).reshape(B, T, 1)
    kernel = partial(_fft_stack_kernel, n_layers=L, n_head=N_HEAD, d_k=D_K,
                     k1=FFT_K1, k2=FFT_K2)
    batch_in = [x, mrow, mcol, cln]
    rep_in = [st["wqkv"], st["bqkv"], st["wo"], st["bo"],
              st["w1"], st["b1"], st["w2"], st["b2"]]
    return pl.pallas_call(
        kernel,
        out_shape=jax.ShapeDtypeStruct((B, T, D), jnp.float32),
        grid=(B,),
        in_specs=[_spec_batch(a) for a in batch_in] + [_spec_rep(a) for a in rep_in],
        out_specs=pl.BlockSpec((1, T, D), lambda b: (b, 0, 0)),
        compiler_params=_PARALLEL,
    )(*batch_in, *rep_in)


def _utt_enc_kernel(x_ref, w1, b1, g1, be1, w2, b2, g2, be2, o_ref, *, k, stride):
    pad = (k - 1) // 2
    x = x_ref[0]                                          # [T_mel, N_MEL]
    h = jnp.maximum(_conv1d_vmem(x, w1[...], b1[...], k, pad, stride), 0.0)
    h = _ln(h) * g1[...] + be1[...]
    h = jnp.maximum(_conv1d_vmem(h, w2[...], b2[...], k, pad, stride), 0.0)
    h = _ln(h) * g2[...] + be2[...]
    o_ref[0] = jnp.mean(h, axis=0, keepdims=True).astype(o_ref.dtype)


def utterance_encoder(p, mels):
    B, T, _ = mels.shape
    rep_in = [p["w1"], p["b1"], p["g1"], p["be1"], p["w2"], p["b2"], p["g2"], p["be2"]]
    return pl.pallas_call(
        partial(_utt_enc_kernel, k=UE_KERNEL, stride=UE_STRIDE),
        out_shape=jax.ShapeDtypeStruct((B, 1, UE_CHANS), jnp.float32),
        grid=(B,),
        in_specs=[_spec_batch(mels)] + [_spec_rep(a) for a in rep_in],
        out_specs=pl.BlockSpec((1, 1, UE_CHANS), lambda b: (b, 0, 0)),
        compiler_params=_PARALLEL,
    )(mels, *rep_in)


def _phn_kernel(x1_ref, x2_ref,
                pw1, pb1, pg1, pbe1, pw2, pb2, pg2, pbe2, pwo, pbo,
                ew1, eb1, eg1, ebe1, ew2, eb2, eg2, ebe2, ewo, ebo,
                wpe, bpe,
                pred_o, enc_o, emb_o, *, k):
    pred = _cnn_latent_block(x1_ref[0], pw1[...], pb1[...], pg1[...], pbe1[...],
                             pw2[...], pb2[...], pg2[...], pbe2[...],
                             pwo[...], pbo[...], k)
    enc = _cnn_latent_block(x2_ref[0], ew1[...], eb1[...], eg1[...], ebe1[...],
                            ew2[...], eb2[...], eg2[...], ebe2[...],
                            ewo[...], ebo[...], k)
    pred_o[0] = pred.astype(pred_o.dtype)
    enc_o[0] = enc.astype(enc_o.dtype)
    emb_o[0] = (jnp.dot(enc, wpe[...], preferred_element_type=jnp.float32)
                + bpe[...]).astype(emb_o.dtype)


def phoneme_block(pp, pe, wpe, bpe, x_pred, x_enc):
    """PhonemeLevelPredictor + PhonemeLevelEncoder + phone_level_embed fused."""
    B, T, _ = x_pred.shape
    order = ("w1", "b1", "g1", "be1", "w2", "b2", "g2", "be2", "wo", "bo")
    rep_in = [pp[n] for n in order] + [pe[n] for n in order] + [wpe, bpe]
    out_shape = (jax.ShapeDtypeStruct((B, T, PHN_LATENT), jnp.float32),
                 jax.ShapeDtypeStruct((B, T, PHN_LATENT), jnp.float32),
                 jax.ShapeDtypeStruct((B, T, D_MODEL), jnp.float32))
    out_specs = [pl.BlockSpec((1, T, PHN_LATENT), lambda b: (b, 0, 0)),
                 pl.BlockSpec((1, T, PHN_LATENT), lambda b: (b, 0, 0)),
                 pl.BlockSpec((1, T, D_MODEL), lambda b: (b, 0, 0))]
    return pl.pallas_call(
        partial(_phn_kernel, k=PLE_KERNEL),
        out_shape=out_shape,
        grid=(B,),
        in_specs=[_spec_batch(x_pred), _spec_batch(x_enc)] + [_spec_rep(a) for a in rep_in],
        out_specs=out_specs,
        compiler_params=_PARALLEL,
    )(x_pred, x_enc, *rep_in)


def _vp_kernel(x_ref, xpe_ref, mcol_ref,
               w1_ref, b1_ref, g1_ref, be1_ref,
               w2_ref, b2_ref, g2_ref, be2_ref,
               wo_ref, bo_ref, o_ref, *, k):
    """Duration / pitch / energy predictors fused; packed [T, 3] output."""
    x = x_ref[0]
    xpe = xpe_ref[0]
    mcol = mcol_ref[0]
    acc = None
    for i in range(3):                     # 0: duration, 1: pitch, 2: energy
        xin = x if i < 2 else xpe
        h = _vp_branch(xin, w1_ref[i], b1_ref[i], g1_ref[i], be1_ref[i],
                       w2_ref[i], b2_ref[i], g2_ref[i], be2_ref[i], k)
        # wo_ref[i] has only column i non-zero -> sum assembles the packed head
        y = jnp.dot(h, wo_ref[i], preferred_element_type=jnp.float32)
        acc = y if acc is None else acc + y
    out = acc + bo_ref[...]
    o_ref[0] = jnp.where(mcol > 0.5, 0.0, out).astype(o_ref.dtype)


def variance_predictors(p, x, x_pe, mask):
    B, T, _ = x.shape
    mcol = mask.astype(jnp.float32).reshape(B, T, 1)
    rep_in = [p["w1"], p["b1"], p["g1"], p["be1"], p["w2"], p["b2"], p["g2"], p["be2"],
              p["wo"], p["bo"]]
    return pl.pallas_call(
        partial(_vp_kernel, k=VP_KERNEL),
        out_shape=jax.ShapeDtypeStruct((B, T, 3), jnp.float32),
        grid=(B,),
        in_specs=[_spec_batch(x), _spec_batch(x_pe), _spec_batch(mcol)]
        + [_spec_rep(a) for a in rep_in],
        out_specs=pl.BlockSpec((1, T, 3), lambda b: (b, 0, 0)),
        compiler_params=_PARALLEL,
    )(x, x_pe, mcol, *rep_in)


def _mel_cln_kernel(x_ref, scale_ref, bias_ref, w_ref, b_ref, o_ref):
    y = jnp.dot(x_ref[0], w_ref[...], preferred_element_type=jnp.float32) + b_ref[...]
    y = _ln(y) * scale_ref[0] + bias_ref[0]
    o_ref[0] = y.astype(o_ref.dtype)


def mel_cln(x, w, b, scale, bias):
    B, T, _ = x.shape
    N = w.shape[1]
    return pl.pallas_call(
        _mel_cln_kernel,
        out_shape=jax.ShapeDtypeStruct((B, T, N), jnp.float32),
        grid=(B,),
        in_specs=[_spec_batch(x), _spec_batch(scale), _spec_batch(bias),
                  _spec_rep(w), _spec_rep(b)],
        out_specs=pl.BlockSpec((1, T, N), lambda b: (b, 0, 0)),
        compiler_params=_PARALLEL,
    )(x, scale, bias, w, b)


def _postnet_kernel(x_ref, w0, b0, w1, b1, w2, b2, w3, b3, w4, b4, o_ref, *, k):
    """5 postnet convs (BatchNorm folded into the weights) + tanh + residual."""
    pad = (k - 1) // 2
    x = x_ref[0]
    h = x
    ws = (w0, w1, w2, w3, w4)
    bs = (b0, b1, b2, b3, b4)
    for i in range(POSTNET_LAYERS):
        h = _conv1d_vmem(h, ws[i][...], bs[i][...], k, pad)
        if i < POSTNET_LAYERS - 1:
            h = jnp.tanh(h)
    o_ref[0] = (h + x).astype(o_ref.dtype)


def postnet(ws, bs, x):
    B, T, C = x.shape
    rep_in = []
    for w, b in zip(ws, bs):
        rep_in += [w, b]
    return pl.pallas_call(
        partial(_postnet_kernel, k=POSTNET_K),
        out_shape=jax.ShapeDtypeStruct((B, T, C), jnp.float32),
        grid=(B,),
        in_specs=[_spec_batch(x)] + [_spec_rep(a) for a in rep_in],
        out_specs=pl.BlockSpec((1, T, C), lambda b: (b, 0, 0)),
        compiler_params=_PARALLEL,
    )(x, *rep_in)


# ----------------------------- parameter init --------------------------------
class RNG:
    def __init__(self, key):
        self.key = key

    def next(self):
        self.key, sub = jax.random.split(self.key)
        return sub


def dense_p(rng, din, dout):
    return (jax.random.normal(rng.next(), (din, dout), jnp.float32) * 0.1,
            jax.random.normal(rng.next(), (dout,), jnp.float32) * 0.01)


def conv_p(rng, k, cin, cout):
    return (jax.random.normal(rng.next(), (k, cin, cout), jnp.float32) * 0.1,
            jax.random.normal(rng.next(), (cout,), jnp.float32) * 0.01)


def emb_p(rng, n, d):
    return jax.random.normal(rng.next(), (n, d), jnp.float32) * 0.1


def ln_p(c):
    return (jnp.ones((c,), jnp.float32), jnp.zeros((c,), jnp.float32))


def sinusoid_table(n_pos, d):
    pos = jnp.arange(n_pos, dtype=jnp.float32)[:, None]
    i = jnp.arange(d, dtype=jnp.float32)[None, :]
    angle = pos / jnp.power(10000.0, 2.0 * jnp.floor(i / 2.0) / d)
    even = (jnp.arange(d) % 2 == 0)[None, :]
    return jnp.where(even, jnp.sin(angle), jnp.cos(angle)).astype(jnp.float32)


def fft_block_params(rng):
    return {
        "wq": dense_p(rng, D_MODEL, N_HEAD * D_K),
        "wk": dense_p(rng, D_MODEL, N_HEAD * D_K),
        "wv": dense_p(rng, D_MODEL, N_HEAD * D_K),
        "wo": dense_p(rng, N_HEAD * D_K, D_MODEL),
        "cln1_s": dense_p(rng, D_MODEL, D_MODEL),
        "cln1_b": dense_p(rng, D_MODEL, D_MODEL),
        "ffn_c1": conv_p(rng, FFT_K1, D_MODEL, D_FF),
        "ffn_c2": conv_p(rng, FFT_K2, D_FF, D_MODEL),
        "cln2_s": dense_p(rng, D_MODEL, D_MODEL),
        "cln2_b": dense_p(rng, D_MODEL, D_MODEL),
    }


def cnn_enc_params(rng, idim):
    return {
        "conv1": conv_p(rng, PLE_KERNEL, idim, PLE_CHANS),
        "ln1": ln_p(PLE_CHANS),
        "conv2": conv_p(rng, PLE_KERNEL, PLE_CHANS, PLE_CHANS),
        "ln2": ln_p(PLE_CHANS),
        "out": dense_p(rng, PLE_CHANS, PHN_LATENT),
    }


def vp_params(rng):
    return {
        "conv1": conv_p(rng, VP_KERNEL, D_MODEL, VP_FILTER),
        "ln1": ln_p(VP_FILTER),
        "conv2": conv_p(rng, VP_KERNEL, VP_FILTER, VP_FILTER),
        "ln2": ln_p(VP_FILTER),
        "out": dense_p(rng, VP_FILTER, 1),
    }


def build_params(rng):
    P = {}
    P["pos_table"] = sinusoid_table(MAX_SEQ, D_MODEL)
    P["speaker_emb"] = emb_p(rng, NUM_SPK, D_MODEL)
    P["lang_emb"] = emb_p(rng, NUM_LANG, D_MODEL)
    P["encoder"] = {
        "word_emb": emb_p(rng, VOCAB, D_MODEL),
        "layers": [fft_block_params(rng) for _ in range(ENC_LAYERS)],
    }
    P["utt_enc"] = {
        "conv1": conv_p(rng, UE_KERNEL, N_MEL, UE_CHANS),
        "ln1": ln_p(UE_CHANS),
        "conv2": conv_p(rng, UE_KERNEL, UE_CHANS, UE_CHANS),
        "ln2": ln_p(UE_CHANS),
    }
    P["phn_enc"] = cnn_enc_params(rng, N_MEL)
    P["phn_pred"] = cnn_enc_params(rng, D_MODEL)
    P["phone_level_embed"] = dense_p(rng, PHN_LATENT, D_MODEL)
    P["va"] = {
        "duration": vp_params(rng),
        "pitch": vp_params(rng),
        "energy": vp_params(rng),
        "pitch_bins": jnp.linspace(0.0, 1.0, N_BINS - 1),
        "energy_bins": jnp.linspace(0.0, 1.0, N_BINS - 1),
        "pitch_emb": emb_p(rng, N_BINS, D_MODEL),
        "energy_emb": emb_p(rng, N_BINS, D_MODEL),
    }
    P["decoder"] = {"layers": [fft_block_params(rng) for _ in range(DEC_LAYERS)]}
    P["mel_linear"] = dense_p(rng, D_MODEL, N_MEL)
    P["cln_scale"] = dense_p(rng, D_MODEL, N_MEL)
    P["cln_bias"] = dense_p(rng, D_MODEL, N_MEL)
    convs = []
    for i in range(POSTNET_LAYERS):
        cin = N_MEL if i == 0 else POSTNET_DIM
        cout = N_MEL if i == POSTNET_LAYERS - 1 else POSTNET_DIM
        w, b = conv_p(rng, POSTNET_K, cin, cout)
        convs.append((w, b, jnp.ones((cout,), jnp.float32), jnp.zeros((cout,), jnp.float32)))
    P["postnet"] = {"convs": convs}
    return P


# --------------------- fuse / repack params for the kernels ------------------
def _lane_conv_w(w):
    """[K, Cin, Cout] -> [Cin, K*Cout] (tap-blocks along lanes)."""
    k, cin, cout = w.shape
    return jnp.transpose(w, (1, 0, 2)).reshape(cin, k * cout)


def fuse_params(P):
    F = {
        "pos_table": P["pos_table"],
        "speaker_emb": P["speaker_emb"],
        "lang_emb": P["lang_emb"],
        "word_emb": P["encoder"]["word_emb"],
        "pitch_bins": P["va"]["pitch_bins"],
        "energy_bins": P["va"]["energy_bins"],
        "pitch_emb": P["va"]["pitch_emb"],
        "energy_emb": P["va"]["energy_emb"],
        "mel_w": P["mel_linear"][0],
        "mel_b": P["mel_linear"][1][None, :],
    }

    def stack_fft(layers):
        return {
            "wqkv": jnp.stack([jnp.concatenate([l["wq"][0], l["wk"][0], l["wv"][0]], axis=1)
                               for l in layers]),
            "bqkv": jnp.stack([jnp.concatenate([l["wq"][1], l["wk"][1], l["wv"][1]])[None, :]
                               for l in layers]),
            "wo": jnp.stack([l["wo"][0] for l in layers]),
            "bo": jnp.stack([l["wo"][1][None, :] for l in layers]),
            "w1": jnp.stack([_lane_conv_w(l["ffn_c1"][0]) for l in layers]),
            "b1": jnp.stack([l["ffn_c1"][1][None, :] for l in layers]),
            "w2": jnp.stack([_lane_conv_w(l["ffn_c2"][0]) for l in layers]),
            "b2": jnp.stack([l["ffn_c2"][1][None, :] for l in layers]),
        }

    F["enc_stack"] = stack_fft(P["encoder"]["layers"])
    F["dec_stack"] = stack_fft(P["decoder"]["layers"])

    # every speaker-conditioned projection fused into a single matmul
    w_cols, b_cols = [], []
    for layers in (P["encoder"]["layers"], P["decoder"]["layers"]):
        for lp in layers:
            for key in ("cln1_s", "cln1_b", "cln2_s", "cln2_b"):
                w_cols.append(lp[key][0])
                b_cols.append(lp[key][1])
    w_cols += [P["cln_scale"][0], P["cln_bias"][0]]
    b_cols += [P["cln_scale"][1], P["cln_bias"][1]]
    F["spk_w"] = jnp.concatenate(w_cols, axis=1)
    F["spk_b"] = jnp.concatenate(b_cols, axis=0)

    def cnn_pack(p, k, cin):
        return {
            "w1": _lane_conv_w(p["conv1"][0]), "b1": p["conv1"][1][None, :],
            "g1": p["ln1"][0][None, :], "be1": p["ln1"][1][None, :],
            "w2": _lane_conv_w(p["conv2"][0]), "b2": p["conv2"][1][None, :],
            "g2": p["ln2"][0][None, :], "be2": p["ln2"][1][None, :],
            "wo": p["out"][0], "bo": p["out"][1][None, :],
        }

    F["phn_pred"] = cnn_pack(P["phn_pred"], PLE_KERNEL, D_MODEL)
    F["phn_enc"] = cnn_pack(P["phn_enc"], PLE_KERNEL, N_MEL)
    F["wpe"] = P["phone_level_embed"][0]
    F["bpe"] = P["phone_level_embed"][1][None, :]

    ue = P["utt_enc"]
    F["utt_enc"] = {
        "w1": _lane_conv_w(ue["conv1"][0]), "b1": ue["conv1"][1][None, :],
        "g1": ue["ln1"][0][None, :], "be1": ue["ln1"][1][None, :],
        "w2": _lane_conv_w(ue["conv2"][0]), "b2": ue["conv2"][1][None, :],
        "g2": ue["ln2"][0][None, :], "be2": ue["ln2"][1][None, :],
    }

    names = ("duration", "pitch", "energy")
    wo_full = jnp.concatenate([P["va"][n]["out"][0] for n in names], axis=1)    # [F, 3]
    F["vp"] = {
        "w1": jnp.stack([_lane_conv_w(P["va"][n]["conv1"][0]) for n in names]),
        "b1": jnp.stack([P["va"][n]["conv1"][1][None, :] for n in names]),
        "g1": jnp.stack([P["va"][n]["ln1"][0][None, :] for n in names]),
        "be1": jnp.stack([P["va"][n]["ln1"][1][None, :] for n in names]),
        "w2": jnp.stack([_lane_conv_w(P["va"][n]["conv2"][0]) for n in names]),
        "b2": jnp.stack([P["va"][n]["conv2"][1][None, :] for n in names]),
        "g2": jnp.stack([P["va"][n]["ln2"][0][None, :] for n in names]),
        "be2": jnp.stack([P["va"][n]["ln2"][1][None, :] for n in names]),
        # column-masked copies so the three heads sum into one packed [T, 3] slab
        "wo": jnp.stack([wo_full * (jnp.arange(3)[None, :] == i) for i in range(3)]),
        "bo": jnp.concatenate([P["va"][n]["out"][1] for n in names])[None, :],
    }

    # postnet: fold BatchNorm (eval, running stats 0/1) into the conv weights
    pw, pb = [], []
    for (w, b, g, beta) in P["postnet"]["convs"]:
        pw.append(_lane_conv_w(w * g[None, None, :]))
        pb.append((b * g + beta)[None, :])
    F["post_w"] = pw
    F["post_b"] = pb
    return F


# ------------------------------ model forward --------------------------------
def get_mask_from_lengths(lengths, max_len):
    ids = jnp.arange(max_len)[None, :]
    return ids >= lengths[:, None]          # True = padded


def length_regulator(x, durations, max_len):
    # TODO(synk): data-dependent expansion gather stays in plain JAX glue.
    B, T, D = x.shape
    mel_lens = jnp.sum(durations, axis=1)
    cum = jnp.cumsum(durations, axis=1)
    frame = jnp.arange(max_len)
    idx = jnp.sum(frame[None, :, None] >= cum[:, None, :], axis=-1)
    idx = jnp.clip(idx, 0, T - 1)
    out = jnp.take_along_axis(x, idx[:, :, None], axis=1)
    valid = (frame[None, :] < mel_lens[:, None]).astype(x.dtype)
    return out * valid[:, :, None], mel_lens


def adaspeech_forward(FP, speakers, texts, src_lens, max_src_len,
                      mels, mel_lens, max_mel_len,
                      p_targets, e_targets, d_targets, avg_targets,
                      languages, phoneme_level_predictor=False,
                      p_control=1.0, e_control=1.0, d_control=1.0):
    B = texts.shape[0]
    src_masks = get_mask_from_lengths(src_lens, max_src_len)
    mel_masks = get_mask_from_lengths(mel_lens, max_mel_len)

    spk = FP["speaker_emb"][speakers]            # [B, D]
    lang = FP["lang_emb"][languages]             # [B, D]

    # one fused, lane-dense matmul for every speaker-conditioned projection
    spk_cond = linear(spk, FP["spk_w"], FP["spk_b"])                      # [B, 544]
    L4 = 4 * D_MODEL
    off = 0
    enc_cln = spk_cond[:, off:off + ENC_LAYERS * L4].reshape(B, ENC_LAYERS, L4)
    off += ENC_LAYERS * L4
    dec_cln = spk_cond[:, off:off + DEC_LAYERS * L4].reshape(B, DEC_LAYERS, L4)
    off += DEC_LAYERS * L4
    mel_scale = spk_cond[:, off:off + N_MEL].reshape(B, 1, N_MEL)
    mel_bias = spk_cond[:, off + N_MEL:off + 2 * N_MEL].reshape(B, 1, N_MEL)

    # encoder: word embedding + positional encoding + fused FFT stack
    x = FP["word_emb"][texts] + FP["pos_table"][:max_src_len][None]
    output = fft_stack(x, src_masks, enc_cln, FP["enc_stack"])

    # utterance encoder (single fused kernel, NWC input -- no transposes)
    xs = utterance_encoder(FP["utt_enc"], mels)                           # [B, 1, D]
    output = output + xs

    # phoneme predictor + encoder + phone-level embedding (single fused kernel)
    # both branches of `phoneme_level_predictor` compute identical forward values
    phn_predict, phn_encode, phn_embed = phoneme_block(
        FP["phn_pred"], FP["phn_enc"], FP["wpe"], FP["bpe"], output, avg_targets)
    output = output + phn_embed

    output = output + spk[:, None, :] + lang[:, None, :]

    # variance adaptor: fused duration/pitch/energy predictors
    pitch_e = FP["pitch_emb"][jnp.searchsorted(FP["pitch_bins"], p_targets)]
    x_pe = output + pitch_e
    preds = variance_predictors(FP["vp"], output, x_pe, src_masks)        # [B, T, 3]
    log_d_pred = preds[..., 0]
    p_pred = preds[..., 1]
    e_pred = preds[..., 2]
    energy_e = FP["energy_emb"][jnp.searchsorted(FP["energy_bins"], e_targets)]
    x_va = x_pe + energy_e
    x_lr, mel_lens_out = length_regulator(x_va, d_targets, max_mel_len)
    d_rounded = d_targets
    mel_masks = get_mask_from_lengths(mel_lens_out, max_mel_len)

    # decoder: positional encoding + fused FFT stack
    dec_in = x_lr + FP["pos_table"][:max_mel_len][None]
    dec_out = fft_stack(dec_in, mel_masks, dec_cln, FP["dec_stack"])

    # mel projection + final conditional LayerNorm (fused)
    mel = mel_cln(dec_out, FP["mel_w"], FP["mel_b"], mel_scale, mel_bias)

    # postnet (5 convs + folded BatchNorm + tanh + residual, fused)
    postnet_out = postnet(FP["post_w"], FP["post_b"], mel)

    return (mel, postnet_out, p_pred, e_pred, log_d_pred, phn_predict,
            d_rounded, src_masks, mel_masks, src_lens, mel_lens_out, phn_encode)


# --------------------------------- main ---------------------------------------
if __name__ == "__main__":
    rng = RNG(jax.random.PRNGKey(0))
    raw_params = build_params(rng)
    params = fuse_params(raw_params)

    B = 2
    MAX_SRC = 8
    MAX_MEL = 16

    speakers = jnp.array([0, 1], jnp.int32)
    languages = jnp.array([0, 1], jnp.int32)
    texts = jax.random.randint(rng.next(), (B, MAX_SRC), 1, VOCAB, dtype=jnp.int32)
    src_lens = jnp.array([8, 6], jnp.int32)
    mel_lens = jnp.array([16, 12], jnp.int32)
    mels = jax.random.normal(rng.next(), (B, MAX_MEL, N_MEL), jnp.float32)
    p_targets = jax.random.uniform(rng.next(), (B, MAX_SRC), jnp.float32)
    e_targets = jax.random.uniform(rng.next(), (B, MAX_SRC), jnp.float32)
    d_targets = jnp.array([[2] * 8, [2] * 6 + [0] * 2], jnp.int32)   # sums == mel_lens
    avg_targets = jax.random.normal(rng.next(), (B, MAX_SRC, N_MEL), jnp.float32)

    outs = adaspeech_forward(
        params, speakers, texts, src_lens, MAX_SRC,
        mels, mel_lens, MAX_MEL,
        p_targets, e_targets, d_targets, avg_targets,
        languages, phoneme_level_predictor=False,
    )
    outs = jax.block_until_ready(outs)

    mel_out, postnet_out = outs[0], outs[1]
    assert mel_out.shape == (B, MAX_MEL, N_MEL)
    assert postnet_out.shape == (B, MAX_MEL, N_MEL)
    assert outs[2].shape == (B, MAX_SRC)                     # pitch predictions
    assert outs[4].shape == (B, MAX_SRC)                     # log-duration predictions
    assert outs[5].shape == (B, MAX_SRC, PHN_LATENT)         # phn_predict
    assert outs[11].shape == (B, MAX_SRC, PHN_LATENT)        # phn_encode
    assert all(bool(jnp.all(jnp.isfinite(o)))
               for o in (mel_out, postnet_out, outs[2], outs[3], outs[4], outs[5]))
    print("KERNEL_OK")
</pallas_src>

<mosaic_0001>
module attributes {stable_mosaic.version = 11 : i64} {
  func.func @_linear_kernel(%arg0: i32, %arg1: memref<2x32xf32, #tpu.memory_space<vmem>>, %arg2: memref<32x544xf32, #tpu.memory_space<vmem>>, %arg3: memref<1x544xf32, #tpu.memory_space<vmem>>, %arg4: memref<2x544xf32, #tpu.memory_space<vmem>>) attributes {dimension_semantics = [#tpu.dimension_semantics<arbitrary>], iteration_bounds = array<i64: 1>, scalar_prefetch = 0 : i64, scratch_operands = 0 : i64, tpu.core_type = #tpu.core_type<tc>, window_params = [{pipeline_mode = #tpu.pipeline_mode<synchronous>, transform_indices = @transform_0, window_bounds = array<i64: 2, 32>}, {pipeline_mode = #tpu.pipeline_mode<synchronous>, transform_indices = @transform_1, window_bounds = array<i64: 32, 544>}, {pipeline_mode = #tpu.pipeline_mode<synchronous>, transform_indices = @transform_2, window_bounds = array<i64: 1, 544>}, {pipeline_mode = #tpu.pipeline_mode<synchronous>, transform_indices = @transform_3, window_bounds = array<i64: 2, 544>}]} {
    %c0 = arith.constant 0 : index
    %c0_0 = arith.constant 0 : index
    %0 = vector.load %arg1[%c0, %c0_0] : memref<2x32xf32, #tpu.memory_space<vmem>>, vector<2x32xf32>
    %c0_1 = arith.constant 0 : index
    %c0_2 = arith.constant 0 : index
    %1 = vector.load %arg2[%c0_1, %c0_2] : memref<32x544xf32, #tpu.memory_space<vmem>>, vector<32x544xf32>
    %cst = arith.constant dense<0.000000e+00> : vector<2x544xf32>
    %2 = tpu.matmul %0, %1, %cst {dimension_numbers = #tpu.dot_dimension_numbers<[1], [0], [0], [1], [0, 0, 1, 1], [], []>} : vector<2x32xf32>, vector<32x544xf32>, vector<2x544xf32> -> vector<2x544xf32>
    %c0_3 = arith.constant 0 : index
    %c0_4 = arith.constant 0 : index
    %3 = vector.load %arg3[%c0_3, %c0_4] : memref<1x544xf32, #tpu.memory_space<vmem>>, vector<1x544xf32>
    %4 = vector.broadcast %3 : vector<1x544xf32> to vector<2x544xf32>
    %5 = arith.addf %2, %4 : vector<2x544xf32>
    %c0_5 = arith.constant 0 : index
    %c0_6 = arith.constant 0 : index
    %6 = vector.load %arg4[%c0_5, %c0_6] : memref<2x544xf32, #tpu.memory_space<vmem>>, vector<2x544xf32>
    tpu.vector_store %arg4[%c0_5, %c0_6], %5 {strides = array<i32>} : memref<2x544xf32, #tpu.memory_space<vmem>>, vector<2x544xf32>,
    return
  }
  func.func @transform_0(%arg0: i32) -> (i32, i32) {
    %c0_i32 = arith.constant 0 : i32
    %c0_i32_0 = arith.constant 0 : i32
    %c0_i32_1 = arith.constant 0 : i32
    return %c0_i32, %c0_i32_0 : i32, i32
  }
  func.func @transform_1(%arg0: i32) -> (i32, i32) {
    %c0_i32 = arith.constant 0 : i32
    %c0_i32_0 = arith.constant 0 : i32
    %c0_i32_1 = arith.constant 0 : i32
    return %c0_i32, %c0_i32_0 : i32, i32
  }
  func.func @transform_2(%arg0: i32) -> (i32, i32) {
    %c0_i32 = arith.constant 0 : i32
    %c0_i32_0 = arith.constant 0 : i32
    %c0_i32_1 = arith.constant 0 : i32
    return %c0_i32, %c0_i32_0 : i32, i32
  }
  func.func @transform_3(%arg0: i32) -> (i32, i32) {
    %c0_i32 = arith.constant 0 : i32
    %c0_i32_0 = arith.constant 0 : i32
    %c0_i32_1 = arith.constant 0 : i32
    return %c0_i32, %c0_i32_0 : i32, i32
  }
}

</mosaic_0001>

<bundles_post_ra>
// kernel: tpu_custom_call.1
= control target key start
LH: loop header
LB: loop body
LE: loop exit
PB: predicated region body
PF: predicated region fallthrough
CT: control target
= control target key end

     0   :  { %8 = vsyncpa [#allocation3], 0  ;;  %s524_s0 = inlined_call_operand.hbm [shape: f32[2,32], index: 0, kind: input, shape index: {}]   ;;  %s525_s1 = inlined_call_operand.hbm [shape: f32[32,544], index: 1, kind: input, shape index: {}]   ;;  %s526_s2 = inlined_call_operand.hbm [shape: f32[1,544], index: 2, kind: input, shape index: {}]   ;;  %s527_s3 = inlined_call_operand.hbm [shape: f32[2,544], index: 3, kind: output, shape index: {}]  }
   0x1   :  { %9 = vsyncpa [#allocation6], 0 }
   0x2   :  { %10 = vsyncpa [#allocation4], 0  ;;  %s480_s12 = smov [#allocation5]  }
   0x3   :  { %s26_s13 = sshll.u32 %s480_s12, 4  ;;  %s27_s13 = int_to_ptr.vmem [resolvable:$true] %s26_s13 }
   0x4   :  { %s402_s14 = scalar_lea.vmem %s27_s13, 2560  ;;  %p407_p1 = scmp.lt.s32.totalorder %s27_s13, %s27_s13 }
   0x5   :  { %p403_p0 = scmp.ne.s32.totalorder %s27_s13, %s402_s14  ;;  %p408_p2 = scmp.lt.s32.totalorder %s402_s14, %s402_s14 }
   0x7   :  { %p409_p3 = por %p408_p2, %p407_p1 }
   0x9   :  { %p410_p4 = pnand %p409_p3, %p403_p0 }
   0xb   :  { %413 = shalt.err (!%p410_p4)
}
   0xc   :  { %s481_s15 = smov 640   ;;  %s482_s16 = smov 40  }
   0xd   :  { %32 = dma.hbm_to_vmem [thread:$0]  %s525_s1, 2560, %s27_s13, [#allocation6], %s481_s15, %s481_s15, %s482_s16  }
   0xe   :  { %s483_s19 = smov [#allocation2]   ;;  %s484_s21 = smov [#allocation7]  }
   0xf   :  { %s17_s20 = sshll.u32 %s483_s19, 4  ;;  %s39_s22 = sshll.u32 %s484_s21, 4  ;;  %s18_s20 = int_to_ptr.vmem [resolvable:$true] %s17_s20  ;;  %s40_s22 = int_to_ptr.vmem [resolvable:$true] %s39_s22 }
  0x10   :  { %s422_s23 = scalar_lea.vmem %s18_s20, 32  ;;  %p427_p6 = scmp.lt.s32.totalorder %s18_s20, %s18_s20 }
  0x11   :  { %p423_p5 = scmp.ne.s32.totalorder %s18_s20, %s422_s23  ;;  %p428_p7 = scmp.lt.s32.totalorder %s422_s23, %s422_s23 }
  0x13   :  { %p429_p8 = por %p428_p7, %p427_p6 }
  0x15   :  { %p430_p9 = pnand %p429_p8, %p423_p5 }
  0x17   :  { %433 = shalt.err (!%p430_p9)
}
  0x18   :  { %20 = dma.hbm_to_vmem [thread:$0]  %s524_s0, 32, %s18_s20, [#allocation3]  }
  0x19   :  { %s442_s26 = scalar_lea.vmem %s40_s22, 80  ;;  %s446_s1 = scalar_lea.vmem %s40_s22, 96 }
  0x1a   :  { %p443_p10 = scmp.ne.s32.totalorder %s40_s22, %s442_s26  ;;  %p447_p11 = scmp.lt.s32.totalorder %s40_s22, %s40_s22 }
  0x1b   :  { %p448_p12 = scmp.lt.s32.totalorder %s446_s1, %s442_s26 }
  0x1d   :  { %p449_p13 = por %p448_p12, %p447_p11 }
  0x1f   :  { %p450_p0 = pnand %p449_p13, %p443_p10 }
  0x21   :  { %453 = shalt.err (!%p450_p0)
}
  0x22   :  { %42 = dma.hbm_to_vmem [thread:$0]  %s526_s2, 80, %s40_s22, [#allocation6]  }
  0x23   :  { %474 = dma.done.wait [#allocation3], 32  }
  0x24   :  { %475 = vsyncadd [#allocation3], 4294967264 }
  0x25   :  { %476 = dma.done.wait [#allocation6], 2640  }
  0x26   :  { %477 = vsyncadd [#allocation6], 4294964656  ;;  %v485_v0 = vmov 0.0   ;;  %v69_v1 = vld [vmem:[#allocation5 + $0x80] sm:$0xff]  ;;  %v71_v2 = vld [vmem:[#allocation5 + $0x90] sm:$0xff]  ;;  %vm100_vm0 = vcmask 261120   ;;  %v75_v22 = vlaneseq }
  0x27   :  { %168 = vmatprep.mubr.f32.mxu0 %v485_v0  ;;  %239 = vmatprep.mubr.f32.mxu1 %v485_v0  ;;  %v68_v3 = vld [vmem:[#allocation5 + $0x78] sm:$0xff]  ;;  %v70_v4 = vld [vmem:[#allocation5 + $0x88] sm:$0xff]  ;;  %v63_v7 = vld [vmem:[#allocation5 + $0x50] sm:$0xff]  ;;  %vm486_vm1 = vmmov 0   ;;  %v487_v28 = vmov 1983009808  }
  0x28   :  { %128 = vmatprep.subr.mxu0 %v69_v1  ;;  %199 = vmatprep.subr.mxu1 %v71_v2  ;;  %v64_v5 = vld [vmem:[#allocation5 + $0x58] sm:$0xff]  ;;  %v66_v6 = vld [vmem:[#allocation5 + $0x68] sm:$0xff]  ;;  %v65_v8 = vld [vmem:[#allocation5 + $0x60] sm:$0xff]  ;;  %v76_v23 = vshrl.u32 %v75_v22, 7  ;;  %v324_v29 = vunpack.c.l.s4 %v487_v28  ;;  %s488_s0 = smov [#allocation8]   ;;  %vm348_vm2 = vcmask 254976  }
  0x29   :  { %129 = vmatpush1.msra.mxu0 %v68_v3  ;;  %200 = vmatpush1.msra.mxu1 %v70_v4  ;;  %v59_v9 = vld [vmem:[#allocation5 + $0x30] sm:$0xff]  ;;  %v61_v10 = vld [vmem:[#allocation5 + $0x40] sm:$0xff]  ;;  %v58_v11 = vld [vmem:[#allocation5 + $0x28] sm:$0xff]  ;;  %s356_s2 = sshll.u32 %s488_s0, 4  ;;  %s357_s2 = int_to_ptr.vmem [resolvable:$true] %s356_s2 }
  0x2a   :  { %130 = vmatprep.subr.mxu0 %v64_v5  ;;  %201 = vmatprep.subr.mxu1 %v66_v6  ;;  %v60_v12 = vld [vmem:[#allocation5 + $0x38] sm:$0xff]  ;;  %v54_v13 = vld [vmem:[#allocation5 + $0x8] sm:$0xff]  ;;  %v53_v15 = vld [vmem:[#allocation5] sm:$0xff]  ;;  %v77_v24 = vsub.s32 0, %v76_v23  ;;  %v85_v25 = vsub.s32 2, %v76_v23  ;;  %v81_v27 = vsub.s32 1, %v76_v23  ;;  %v325_v34 = vunpack.c.0.s8 %v324_v29  ;;  %p459_p2 = scmp.lt.s32.totalorder %s357_s2, %s357_s2 }
  0x2b   :  { %131 = vmatpush1.msra.mxu0 %v63_v7  ;;  %202 = vmatpush1.msra.mxu1 %v65_v8  ;;  %v56_v14 = vld [vmem:[#allocation5 + $0x18] sm:$0xff]  ;;  %v55_v16 = vld [vmem:[#allocation5 + $0x10] sm:$0xff]  ;;  %v62_v20 = vld [vmem:[#allocation5 + $0x48] sm:$0xff]  ;;  %v89_v30 = vsub.s32 3, %v76_v23  ;;  %v93_v42 = vsub.s32 4, %v76_v23  ;;  %s454_s29 = scalar_lea.vmem %s357_s2, 160 }
  0x2c   :  { %132 = vmatprep.subr.mxu0 %v59_v9  ;;  %203 = vmatprep.subr.mxu1 %v61_v10  ;;  %v52_v17 = vld [vmem:[#allocation2] sm:$0x3]  ;;  %v67_v19 = vld [vmem:[#allocation5 + $0x70] sm:$0xff]  ;;  %v57_v21 = vld [vmem:[#allocation5 + $0x20] sm:$0xff]  ;;  %v328_v44 = vsub.s32 %v325_v34, %v76_v23  ;;  %p455_p1 = scmp.ne.s32.totalorder %s357_s2, %s454_s29  ;;  %p460_p3 = scmp.lt.s32.totalorder %s454_s29, %s454_s29 }
  0x2d   :  { %133 = vmatpush1.msra.mxu0 %v58_v11  ;;  %204 = vmatpush1.msra.mxu1 %v60_v12  ;;  %v72_v18 = vld [vmem:[#allocation5 + $0x98] sm:$0xff]  ;;  %v73_v26 = vld [vmem:[#allocation7] sm:$0x1f] }
  0x2e   :  { %134 = vmatprep.subr.mxu0 %v54_v13  ;;  %205 = vmatprep.subr.mxu1 %v56_v14  ;;  %v78_v31 = vrot.slane %v73_v26, %v77_v24  ;;  %v86_v32 = vrot.slane %v73_v26, %v85_v25  ;;  %v82_v33 = vrot.slane %v73_v26, %v81_v27  ;;  %p461_p4 = por %p460_p3, %p459_p2 }
  0x2f   :  { %135 = vmatpush1.msra.mxu0 %v53_v15  ;;  %206 = vmatpush1.msra.mxu1 %v55_v16  ;;  %v90_v35 = vrot.slane %v73_v26, %v89_v30  ;;  %v94_v48 = vrot.slane %v73_v26, %v93_v42 }
  0x30   :  { %366 = vmatmul.mubr.msk.f32.vlgmr.msra.gmra.mxu0 %vm100_vm0, %v52_v17  ;;  %367 = vmatmul.mubr.msk.f32.vlgmr.msra.gmra.mxu1 %vm100_vm0, %v52_v17  ;;  %p462_p5 = pnand %p461_p4, %p455_p1 }
  0x31   :  { %374 = vmatprep.subr.mxu0 %v485_v0  ;;  %382 = vmatprep.mubr.msk.f32.mxu0 %vm486_vm1, %v485_v0 }
  0x32   :  { %375 = vmatpush3.msra.mxu0 %v72_v18 }
  0x33   :  { %376 = vmatprep.subr.mxu0 %v485_v0 }
  0x34   :  { %377 = vmatpush3.msra.mxu0 %v67_v19 }
  0x35   :  { %378 = vmatprep.subr.mxu0 %v485_v0 }
  0x36   :  { %379 = vmatpush3.msra.mxu0 %v62_v20 }
  0x37   :  { %380 = vmatprep.subr.mxu0 %v485_v0 }
  0x38   :  { %381 = vmatpush3.msra.mxu0 %v57_v21 }
  0x39   :  { %383 = vmatmul.mubr.msk.f32.vlgmr.msra.gmra.mxu0 %vm100_vm0, %v52_v17 }
  0xf0   :  { %v170_v36 = vpop.f32.mrf.mxu0  ;;  %v241_v37 = vpop.f32.mrf.mxu1 }
  0xf1   :  { %v171_v38 = vadd.f32 %v170_v36, %v78_v31  ;;  %v242_v39 = vadd.f32 %v241_v37, %v86_v32 }
  0xf2   :  { %v172_v40 = vpop.f32.mrf.mxu0  ;;  %v243_v41 = vpop.f32.mrf.mxu1 }
  0xf3   :  { %v173_v43 = vadd.f32 %v172_v40, %v82_v33  ;;  %v244_v45 = vadd.f32 %v243_v41, %v90_v35 }
  0xf5   :  { %v321_v46 = vcombine.low %v171_v38, %v173_v43  ;;  %v322_v47 = vcombine.low %v242_v39, %v244_v45 }
  0xf7   :  { %v329_v49 = vrot.slane %v321_v46, %v328_v44  ;;  %v336_v50 = vrot.slane %v322_v47, %v328_v44 }
  0xf9   :  { %v312_v51 = vpop.f32.mrf.mxu0  ;;  %v337_v52 = vcombine.low %v329_v49, %v336_v50 }
  0xfa   :  { %v313_v53 = vadd.f32 %v312_v51, %v94_v48 }
  0xfb   :  { %v384_v54 = vpop.f32.mrf.mxu0  ;;  %347 = vst [vmem:[#allocation8] sm:$0xff] %v337_v52 }
  0xfc   :  { %v344_v55 = vrot.slane %v313_v53, %v328_v44 }
  0xfe   :  { %349 = vst.msk [vmem:[#allocation8 + $0x8] sm:$0x3] %vm348_vm2, %v344_v55 }
  0xff   :  { %465 = shalt.err (!%p462_p5)
}
 0x100   :  { %359 = dma.vmem_to_hbm [thread:$0]  %s357_s2, 160, %s527_s3, [#allocation4]  }
 0x101   :  { %478 = dma.done.wait [#allocation4], 160  }
 0x102   :  { %479 = vsyncadd [#allocation4], 4294967136 }
 0x103   :  { %363 = vsyncpa [#allocation3], 1 }
 0x104   :  { %364 = vsyncpa [#allocation6], 1 }
 0x105   :  { %365 = vsyncpa [#allocation4], 1 }

</bundles_post_ra>
